<compile_context>
chip_gen: v7x
topology: tpu7x:2x2x1
jax: 0.10.0
libtpu: 0.0.40
codegen_flags: <defaults>
</compile_context>

<pallas_src>
import functools

import jax
import jax.numpy as jnp
import numpy as np
from jax import lax
from jax.experimental import pallas as pl
from jax.experimental.pallas import tpu as pltpu


def _round_up(x, n):
    return ((x + n - 1) // n) * n


def _arcface_kernel(emb_ref, kn_ref, label_ref,
                    cos_ref, rowloss_ref, tgt_ref,
                    l_scr, t_scr,
                    *, s, cos_m, sin_m, mm, threshold,
                    n_classes, c_tile, c_padded):
    j = pl.program_id(1)                      # class-tile index (reduction axis)
    nj = pl.num_programs(1)

    @pl.when(j == 0)
    def _():
        l_scr[...] = jnp.zeros_like(l_scr)
        t_scr[...] = jnp.zeros_like(t_scr)

    # --- cos_theta = clamp(emb @ kernel_norm, -1, 1) (bf16 MXU, f32 acc) ----
    cos = jnp.dot(emb_ref[...], kn_ref[...],
                  preferred_element_type=jnp.float32)
    cos = jnp.clip(cos, -1.0, 1.0)
    cos_ref[...] = cos                                        # (tb, tc) f32

    tb_, tc_ = cos.shape
    label = label_ref[...]                                    # (tb, 1) int32
    col = j * c_tile + lax.broadcasted_iota(jnp.int32, (tb_, tc_), 1)
    onehot = col == label                                     # (tb, tc)

    # target cos per row (0 if the label is not in this class tile)
    tgt_cos = jnp.sum(jnp.where(onehot, cos, 0.0), axis=-1, keepdims=True)
    in_tile = jnp.logical_and(label >= j * c_tile,
                              label < j * c_tile + c_tile)    # (tb, 1)

    # --- ArcFace margin math on a (tb,1) vector only -------------------------
    sin_t = jnp.sqrt(jnp.maximum(1.0 - tgt_cos * tgt_cos, 0.0))
    ctm = tgt_cos * cos_m - sin_t * sin_m
    ctm = jnp.where((tgt_cos - threshold) <= 0.0, tgt_cos - mm, ctm)
    tgt_logit = s * ctm                                       # (tb, 1)

    # --- streaming CE with fixed max (= s): exp(s*cos - s) <= 1 always -------
    e = jnp.exp((cos - 1.0) * s)                              # (tb, tc), EUP
    if n_classes != c_padded:                 # static: mask padded class cols
        e = jnp.where(col < n_classes, e, 0.0)
    tile_sum = jnp.sum(e, axis=-1, keepdims=True)             # (tb, 1)
    # swap the unmargined target term for the margined one (only if in tile)
    corr = jnp.where(in_tile,
                     jnp.exp(tgt_logit - s) - jnp.exp((tgt_cos - 1.0) * s),
                     0.0)
    l_scr[...] = l_scr[...] + tile_sum + corr
    t_scr[...] = t_scr[...] + jnp.where(in_tile, tgt_logit, 0.0)

    @pl.when(j == nj - 1)
    def _():
        # per-row cross entropy: logsumexp(output) - output[label]
        rowloss_ref[...] = (s + jnp.log(jnp.maximum(l_scr[...], 1e-30))
                            - t_scr[...])
        tgt_ref[...] = t_scr[...]


def arcface_forward(embeddings, kernel_A, kernel_B, label, *, s, m,
                    tb=256, tc=1024):
    """Returns (loss, output, cos_theta) exactly like Arcface.forward."""
    B, E = embeddings.shape

    # --- kernel_norm precomputed once (f32), cast to bf16 for the MXU --------
    if kernel_B is None:                       # non-bottleneck path
        ker = kernel_A.astype(jnp.float32)
    else:
        ker = jnp.dot(kernel_A.astype(jnp.float32), kernel_B.astype(jnp.float32),
                      preferred_element_type=jnp.float32)
    C = ker.shape[1]
    col_norm = jnp.sqrt(jnp.sum(ker * ker, axis=0, keepdims=True)) + 1e-6
    kn = (ker / col_norm).astype(jnp.bfloat16)                # (E, C)

    # --- tiling: tb multiple of 8 (sublane), tc multiple of 128 (lane-dense) -
    tb = min(tb, _round_up(B, 8))
    tc = min(tc, _round_up(C, 128))
    b_pad = _round_up(B, tb)
    if b_pad // tb < 2 and tb > 8:            # v7x: span both TensorCores
        tb = max(8, _round_up(tb // 2, 8))
        b_pad = _round_up(B, tb)
    c_pad = _round_up(C, tc)

    emb_p = jnp.pad(embeddings.astype(jnp.bfloat16), ((0, b_pad - B), (0, 0)))
    kn_p = jnp.pad(kn, ((0, 0), (0, c_pad - C)))
    label_i = label.astype(jnp.int32)
    label_p = jnp.pad(label_i.reshape(B, 1), ((0, b_pad - B), (0, 0)),
                      constant_values=-1)

    kernel_fn = functools.partial(
        _arcface_kernel,
        s=float(s),
        cos_m=float(np.cos(m)),
        sin_m=float(np.sin(m)),
        mm=float(np.sin(m) * m),
        threshold=float(np.cos(np.pi - m)),
        n_classes=C, c_tile=tc, c_padded=c_pad)

    cos_p, rowloss, tgt = pl.pallas_call(
        kernel_fn,
        out_shape=(
            jax.ShapeDtypeStruct((b_pad, c_pad), jnp.float32),  # cos_theta
            jax.ShapeDtypeStruct((b_pad, 1), jnp.float32),      # per-row CE
            jax.ShapeDtypeStruct((b_pad, 1), jnp.float32),      # s*cos(th+m) @ tgt
        ),
        grid_spec=pltpu.PrefetchScalarGridSpec(
            num_scalar_prefetch=0,
            grid=(b_pad // tb, c_pad // tc),
            in_specs=[
                pl.BlockSpec((tb, E), lambda i, j: (i, 0)),     # embeddings
                pl.BlockSpec((E, tc), lambda i, j: (0, j)),     # kernel_norm
                pl.BlockSpec((tb, 1), lambda i, j: (i, 0)),     # labels
            ],
            out_specs=[
                pl.BlockSpec((tb, tc), lambda i, j: (i, j)),
                pl.BlockSpec((tb, 1), lambda i, j: (i, 0)),
                pl.BlockSpec((tb, 1), lambda i, j: (i, 0)),
            ],
            scratch_shapes=[pltpu.VMEM((tb, 1), jnp.float32)] * 2,  # l, tgt
        ),
        compiler_params=pltpu.CompilerParams(
            dimension_semantics=("parallel", "arbitrary"),
            vmem_limit_bytes=48 * 1024 * 1024,    # fits v7x's 64 MiB VMEM
        ),
    )(emb_p, kn_p, label_p)

    cos_theta = cos_p[:B, :C]
    # output = s*cos with the target column replaced by the margined logit
    output = (float(s) * cos_theta).at[jnp.arange(B), label_i].set(tgt[:B, 0])
    loss = jnp.mean(rowloss[:B, 0])            # mean CE over the real batch
    return loss, output, cos_theta


def _arcface_reference(embeddings, kernel_A, kernel_B, label, *, s, m):
    """Pure-JAX reference with the same bf16-matmul / f32-accumulate precision."""
    ker = jnp.dot(kernel_A.astype(jnp.float32), kernel_B.astype(jnp.float32),
                  preferred_element_type=jnp.float32)
    col_norm = jnp.sqrt(jnp.sum(ker * ker, axis=0, keepdims=True)) + 1e-6
    kn = (ker / col_norm).astype(jnp.bfloat16)
    cos = jnp.clip(jnp.dot(embeddings.astype(jnp.bfloat16), kn,
                           preferred_element_type=jnp.float32), -1.0, 1.0)
    cos_m, sin_m = float(np.cos(m)), float(np.sin(m))
    mm, threshold = float(np.sin(m) * m), float(np.cos(np.pi - m))
    sin = jnp.sqrt(jnp.maximum(1.0 - cos * cos, 0.0))
    ctm = jnp.where((cos - threshold) <= 0.0, cos - mm,
                    cos * cos_m - sin * sin_m)
    onehot = jnp.arange(cos.shape[1])[None, :] == label[:, None]
    output = jnp.where(onehot, ctm, cos) * float(s)
    lse = jax.scipy.special.logsumexp(output, axis=-1)
    tgt = jnp.sum(jnp.where(onehot, output, 0.0), axis=-1)
    return jnp.mean(lse - tgt), output, cos


def _init_arc_kernel(key, rows, cols):
    """uniform_(-1,1).renorm_(2,1,1e-5).mul_(1e5)  ==> unit-l2-norm columns."""
    w = jax.random.uniform(key, (rows, cols), jnp.float32, minval=-1.0, maxval=1.0)
    col_norm = jnp.sqrt(jnp.sum(w * w, axis=0, keepdims=True))
    return w / col_norm


if __name__ == "__main__":
    # args: embedding_size=32, arc_bottleneck=16, arc_classnum=24, arc_s=64, arc_m=0.5
    B, E, BOT, C = 8, 32, 16, 24
    S, M = 64.0, 0.5

    key = jax.random.PRNGKey(0)
    k_emb, k_a, k_b, k_lab = jax.random.split(key, 4)

    embeddings = jax.random.normal(k_emb, (B, E), jnp.float32)
    kernel_A = _init_arc_kernel(k_a, E, BOT)
    kernel_B = _init_arc_kernel(k_b, BOT, C)
    label = jax.random.randint(k_lab, (B,), 0, C, dtype=jnp.int32)

    loss, output, cos_theta = arcface_forward(
        embeddings, kernel_A, kernel_B, label, s=S, m=M)
    jax.block_until_ready((loss, output, cos_theta))

    # shape / range sanity
    assert output.shape == (B, C) and cos_theta.shape == (B, C)
    assert bool(jnp.all(cos_theta <= 1.0)) and bool(jnp.all(cos_theta >= -1.0))
    assert bool(jnp.isfinite(loss))

    # logic check against a matched-precision pure-JAX reference
    loss_r, out_r, cos_r = _arcface_reference(
        embeddings, kernel_A, kernel_B, label, s=S, m=M)
    np.testing.assert_allclose(np.asarray(cos_theta), np.asarray(cos_r),
                               atol=2e-2, rtol=1e-2)
    np.testing.assert_allclose(np.asarray(output), np.asarray(out_r),
                               atol=1.5, rtol=1e-2)
    np.testing.assert_allclose(float(loss), float(loss_r), atol=0.2, rtol=1e-2)

    print("KERNEL_OK")
</pallas_src>

<mosaic_0001>
module attributes {stable_mosaic.version = 11 : i64} {
  func.func @_arcface_kernel(%arg0: i32, %arg1: i32, %arg2: memref<8x32xbf16, #tpu.memory_space<vmem>>, %arg3: memref<32x128xbf16, #tpu.memory_space<vmem>>, %arg4: memref<8x1xi32, #tpu.memory_space<vmem>>, %arg5: memref<8x128xf32, #tpu.memory_space<vmem>>, %arg6: memref<8x1xf32, #tpu.memory_space<vmem>>, %arg7: memref<8x1xf32, #tpu.memory_space<vmem>>, %arg8: memref<8x1xf32, #tpu.memory_space<vmem>>, %arg9: memref<8x1xf32, #tpu.memory_space<vmem>>) attributes {dimension_semantics = [#tpu.dimension_semantics<parallel>, #tpu.dimension_semantics<arbitrary>], iteration_bounds = array<i64: 1, 1>, scalar_prefetch = 0 : i64, scratch_operands = 2 : i64, tpu.core_type = #tpu.core_type<tc>, window_params = [{transform_indices = @transform_0, window_bounds = array<i64: 8, 32>}, {transform_indices = @transform_1, window_bounds = array<i64: 32, 128>}, {transform_indices = @transform_2, window_bounds = array<i64: 8, 1>}, {transform_indices = @transform_3, window_bounds = array<i64: 8, 128>}, {transform_indices = @transform_4, window_bounds = array<i64: 8, 1>}, {transform_indices = @transform_5, window_bounds = array<i64: 8, 1>}]} {
    %c0_i32 = arith.constant 0 : i32
    %0 = arith.cmpi eq, %arg1, %c0_i32 : i32
    %1 = arith.extui %0 : i1 to i32
    %c0_i32_0 = arith.constant 0 : i32
    %2 = arith.cmpi ne, %1, %c0_i32_0 : i32
    scf.if %2 {
      %cst_42 = arith.constant 0.000000e+00 : f32
      %84 = vector.broadcast %cst_42 : f32 to vector<8x1xf32>
      %c0_43 = arith.constant 0 : index
      %c0_44 = arith.constant 0 : index
      %85 = vector.load %arg8[%c0_43, %c0_44] : memref<8x1xf32, #tpu.memory_space<vmem>>, vector<8x1xf32>
      tpu.vector_store %arg8[%c0_43, %c0_44], %84 {strides = array<i32>} : memref<8x1xf32, #tpu.memory_space<vmem>>, vector<8x1xf32>,
      %cst_45 = arith.constant 0.000000e+00 : f32
      %86 = vector.broadcast %cst_45 : f32 to vector<8x1xf32>
      %c0_46 = arith.constant 0 : index
      %c0_47 = arith.constant 0 : index
      %87 = vector.load %arg9[%c0_46, %c0_47] : memref<8x1xf32, #tpu.memory_space<vmem>>, vector<8x1xf32>
      tpu.vector_store %arg9[%c0_46, %c0_47], %86 {strides = array<i32>} : memref<8x1xf32, #tpu.memory_space<vmem>>, vector<8x1xf32>,
    } else {
    }
    %c0 = arith.constant 0 : index
    %c0_1 = arith.constant 0 : index
    %3 = vector.load %arg2[%c0, %c0_1] : memref<8x32xbf16, #tpu.memory_space<vmem>>, vector<8x32xbf16>
    %c0_2 = arith.constant 0 : index
    %c0_3 = arith.constant 0 : index
    %4 = vector.load %arg3[%c0_2, %c0_3] : memref<32x128xbf16, #tpu.memory_space<vmem>>, vector<32x128xbf16>
    %cst = arith.constant dense<0.000000e+00> : vector<8x128xf32>
    %5 = tpu.matmul %3, %4, %cst {dimension_numbers = #tpu.dot_dimension_numbers<[1], [0], [0], [1], [0, 0, 1, 1], [], []>} : vector<8x32xbf16>, vector<32x128xbf16>, vector<8x128xf32> -> vector<8x128xf32>
    %cst_4 = arith.constant -1.000000e+00 : f32
    %cst_5 = arith.constant 1.000000e+00 : f32
    %6 = vector.broadcast %cst_4 : f32 to vector<8x128xf32>
    %7 = arith.maximumf %6, %5 : vector<8x128xf32>
    %8 = vector.broadcast %cst_5 : f32 to vector<8x128xf32>
    %9 = arith.minimumf %8, %7 : vector<8x128xf32>
    %c0_6 = arith.constant 0 : index
    %c0_7 = arith.constant 0 : index
    %10 = vector.load %arg5[%c0_6, %c0_7] : memref<8x128xf32, #tpu.memory_space<vmem>>, vector<8x128xf32>
    tpu.vector_store %arg5[%c0_6, %c0_7], %9 {strides = array<i32>} : memref<8x128xf32, #tpu.memory_space<vmem>>, vector<8x128xf32>,
    %c0_8 = arith.constant 0 : index
    %c0_9 = arith.constant 0 : index
    %11 = vector.load %arg4[%c0_8, %c0_9] : memref<8x1xi32, #tpu.memory_space<vmem>>, vector<8x1xi32>
    %c128_i32 = arith.constant 128 : i32
    %12 = arith.muli %arg1, %c128_i32 : i32
    %13 = tpu.iota {dimensions = array<i32: 1>} : vector<8x128xi32>
    %14 = vector.broadcast %12 : i32 to vector<8x128xi32>
    %15 = arith.addi %14, %13 : vector<8x128xi32>
    %16 = vector.broadcast %11 : vector<8x1xi32> to vector<8x128xi32>
    %17 = arith.cmpi eq, %15, %16 : vector<8x128xi32>
    %cst_10 = arith.constant 0.000000e+00 : f32
    %18 = vector.broadcast %cst_10 : f32 to vector<8x128xf32>
    %19 = arith.select %17, %9, %18 : vector<8x128xi1>, vector<8x128xf32>
    %cst_11 = arith.constant dense<0.000000e+00> : vector<8xf32>
    %20 = vector.multi_reduction <add>, %19, %cst_11 [1] : vector<8x128xf32> to vector<8xf32>
    %21 = vector.shape_cast %20 : vector<8xf32> to vector<8x1xf32>
    %c128_i32_12 = arith.constant 128 : i32
    %22 = arith.muli %arg1, %c128_i32_12 : i32
    %23 = vector.broadcast %22 : i32 to vector<8x1xi32>
    %24 = arith.cmpi sge, %11, %23 : vector<8x1xi32>
    %c128_i32_13 = arith.constant 128 : i32
    %25 = arith.muli %arg1, %c128_i32_13 : i32
    %c128_i32_14 = arith.constant 128 : i32
    %26 = arith.addi %25, %c128_i32_14 : i32
    %27 = vector.broadcast %26 : i32 to vector<8x1xi32>
    %28 = arith.cmpi slt, %11, %27 : vector<8x1xi32>
    %29 = arith.andi %24, %28 : vector<8x1xi1>
    %30 = arith.mulf %21, %21 : vector<8x1xf32>
    %cst_15 = arith.constant 1.000000e+00 : f32
    %31 = vector.broadcast %cst_15 : f32 to vector<8x1xf32>
    %32 = arith.subf %31, %30 : vector<8x1xf32>
    %cst_16 = arith.constant 0.000000e+00 : f32
    %33 = vector.broadcast %cst_16 : f32 to vector<8x1xf32>
    %34 = arith.maximumf %32, %33 : vector<8x1xf32>
    %35 = math.sqrt %34 : vector<8x1xf32>
    %cst_17 = arith.constant 0.87758255 : f32
    %36 = vector.broadcast %cst_17 : f32 to vector<8x1xf32>
    %37 = arith.mulf %21, %36 : vector<8x1xf32>
    %cst_18 = arith.constant 0.47942555 : f32
    %38 = vector.broadcast %cst_18 : f32 to vector<8x1xf32>
    %39 = arith.mulf %35, %38 : vector<8x1xf32>
    %40 = arith.subf %37, %39 : vector<8x1xf32>
    %cst_19 = arith.constant -0.87758255 : f32
    %41 = vector.broadcast %cst_19 : f32 to vector<8x1xf32>
    %42 = arith.subf %21, %41 : vector<8x1xf32>
    %cst_20 = arith.constant 0.000000e+00 : f32
    %43 = vector.broadcast %cst_20 : f32 to vector<8x1xf32>
    %44 = arith.cmpf ole, %42, %43 : vector<8x1xf32>
    %cst_21 = arith.constant 0.239712775 : f32
    %45 = vector.broadcast %cst_21 : f32 to vector<8x1xf32>
    %46 = arith.subf %21, %45 : vector<8x1xf32>
    %47 = arith.select %44, %46, %40 : vector<8x1xi1>, vector<8x1xf32>
    %cst_22 = arith.constant 6.400000e+01 : f32
    %48 = vector.broadcast %cst_22 : f32 to vector<8x1xf32>
    %49 = arith.mulf %48, %47 : vector<8x1xf32>
    %cst_23 = arith.constant 1.000000e+00 : f32
    %50 = vector.broadcast %cst_23 : f32 to vector<8x128xf32>
    %51 = arith.subf %9, %50 : vector<8x128xf32>
    %cst_24 = arith.constant 6.400000e+01 : f32
    %52 = vector.broadcast %cst_24 : f32 to vector<8x128xf32>
    %53 = arith.mulf %51, %52 : vector<8x128xf32>
    %54 = math.exp %53 : vector<8x128xf32>
    %c24_i32 = arith.constant 24 : i32
    %55 = vector.broadcast %c24_i32 : i32 to vector<8x128xi32>
    %56 = arith.cmpi slt, %15, %55 : vector<8x128xi32>
    %cst_25 = arith.constant 0.000000e+00 : f32
    %57 = vector.broadcast %cst_25 : f32 to vector<8x128xf32>
    %58 = arith.select %56, %54, %57 : vector<8x128xi1>, vector<8x128xf32>
    %cst_26 = arith.constant dense<0.000000e+00> : vector<8xf32>
    %59 = vector.multi_reduction <add>, %58, %cst_26 [1] : vector<8x128xf32> to vector<8xf32>
    %60 = vector.shape_cast %59 : vector<8xf32> to vector<8x1xf32>
    %cst_27 = arith.constant 6.400000e+01 : f32
    %61 = vector.broadcast %cst_27 : f32 to vector<8x1xf32>
    %62 = arith.subf %49, %61 : vector<8x1xf32>
    %63 = math.exp %62 : vector<8x1xf32>
    %cst_28 = arith.constant 1.000000e+00 : f32
    %64 = vector.broadcast %cst_28 : f32 to vector<8x1xf32>
    %65 = arith.subf %21, %64 : vector<8x1xf32>
    %cst_29 = arith.constant 6.400000e+01 : f32
    %66 = vector.broadcast %cst_29 : f32 to vector<8x1xf32>
    %67 = arith.mulf %65, %66 : vector<8x1xf32>
    %68 = math.exp %67 : vector<8x1xf32>
    %69 = arith.subf %63, %68 : vector<8x1xf32>
    %cst_30 = arith.constant 0.000000e+00 : f32
    %70 = vector.broadcast %cst_30 : f32 to vector<8x1xf32>
    %71 = arith.select %29, %69, %70 : vector<8x1xi1>, vector<8x1xf32>
    %c0_31 = arith.constant 0 : index
    %c0_32 = arith.constant 0 : index
    %72 = vector.load %arg8[%c0_31, %c0_32] : memref<8x1xf32, #tpu.memory_space<vmem>>, vector<8x1xf32>
    %73 = arith.addf %72, %60 : vector<8x1xf32>
    %74 = arith.addf %73, %71 : vector<8x1xf32>
    %c0_33 = arith.constant 0 : index
    %c0_34 = arith.constant 0 : index
    %75 = vector.load %arg8[%c0_33, %c0_34] : memref<8x1xf32, #tpu.memory_space<vmem>>, vector<8x1xf32>
    tpu.vector_store %arg8[%c0_33, %c0_34], %74 {strides = array<i32>} : memref<8x1xf32, #tpu.memory_space<vmem>>, vector<8x1xf32>,
    %c0_35 = arith.constant 0 : index
    %c0_36 = arith.constant 0 : index
    %76 = vector.load %arg9[%c0_35, %c0_36] : memref<8x1xf32, #tpu.memory_space<vmem>>, vector<8x1xf32>
    %cst_37 = arith.constant 0.000000e+00 : f32
    %77 = vector.broadcast %cst_37 : f32 to vector<8x1xf32>
    %78 = arith.select %29, %49, %77 : vector<8x1xi1>, vector<8x1xf32>
    %79 = arith.addf %76, %78 : vector<8x1xf32>
    %c0_38 = arith.constant 0 : index
    %c0_39 = arith.constant 0 : index
    %80 = vector.load %arg9[%c0_38, %c0_39] : memref<8x1xf32, #tpu.memory_space<vmem>>, vector<8x1xf32>
    tpu.vector_store %arg9[%c0_38, %c0_39], %79 {strides = array<i32>} : memref<8x1xf32, #tpu.memory_space<vmem>>, vector<8x1xf32>,
    %c0_i32_40 = arith.constant 0 : i32
    %81 = arith.cmpi eq, %arg1, %c0_i32_40 : i32
    %82 = arith.extui %81 : i1 to i32
    %c0_i32_41 = arith.constant 0 : i32
    %83 = arith.cmpi ne, %82, %c0_i32_41 : i32
    scf.if %83 {
      %c0_42 = arith.constant 0 : index
      %c0_43 = arith.constant 0 : index
      %84 = vector.load %arg8[%c0_42, %c0_43] : memref<8x1xf32, #tpu.memory_space<vmem>>, vector<8x1xf32>
      %cst_44 = arith.constant 1.000000e-30 : f32
      %85 = vector.broadcast %cst_44 : f32 to vector<8x1xf32>
      %86 = arith.maximumf %84, %85 : vector<8x1xf32>
      %87 = math.log %86 : vector<8x1xf32>
      %cst_45 = arith.constant 6.400000e+01 : f32
      %88 = vector.broadcast %cst_45 : f32 to vector<8x1xf32>
      %89 = arith.addf %88, %87 : vector<8x1xf32>
      %c0_46 = arith.constant 0 : index
      %c0_47 = arith.constant 0 : index
      %90 = vector.load %arg9[%c0_46, %c0_47] : memref<8x1xf32, #tpu.memory_space<vmem>>, vector<8x1xf32>
      %91 = arith.subf %89, %90 : vector<8x1xf32>
      %c0_48 = arith.constant 0 : index
      %c0_49 = arith.constant 0 : index
      %92 = vector.load %arg6[%c0_48, %c0_49] : memref<8x1xf32, #tpu.memory_space<vmem>>, vector<8x1xf32>
      tpu.vector_store %arg6[%c0_48, %c0_49], %91 {strides = array<i32>} : memref<8x1xf32, #tpu.memory_space<vmem>>, vector<8x1xf32>,
      %c0_50 = arith.constant 0 : index
      %c0_51 = arith.constant 0 : index
      %93 = vector.load %arg9[%c0_50, %c0_51] : memref<8x1xf32, #tpu.memory_space<vmem>>, vector<8x1xf32>
      %c0_52 = arith.constant 0 : index
      %c0_53 = arith.constant 0 : index
      %94 = vector.load %arg7[%c0_52, %c0_53] : memref<8x1xf32, #tpu.memory_space<vmem>>, vector<8x1xf32>
      tpu.vector_store %arg7[%c0_52, %c0_53], %93 {strides = array<i32>} : memref<8x1xf32, #tpu.memory_space<vmem>>, vector<8x1xf32>,
    } else {
    }
    return
  }
  func.func @transform_0(%arg0: i32, %arg1: i32) -> (i32, i32) {
    %c0_i32 = arith.constant 0 : i32
    %c0_i32_0 = arith.constant 0 : i32
    return %arg0, %c0_i32 : i32, i32
  }
  func.func @transform_1(%arg0: i32, %arg1: i32) -> (i32, i32) {
    %c0_i32 = arith.constant 0 : i32
    %c0_i32_0 = arith.constant 0 : i32
    return %c0_i32, %arg1 : i32, i32
  }
  func.func @transform_2(%arg0: i32, %arg1: i32) -> (i32, i32) {
    %c0_i32 = arith.constant 0 : i32
    %c0_i32_0 = arith.constant 0 : i32
    return %arg0, %c0_i32 : i32, i32
  }
  func.func @transform_3(%arg0: i32, %arg1: i32) -> (i32, i32) {
    %c0_i32 = arith.constant 0 : i32
    return %arg0, %arg1 : i32, i32
  }
  func.func @transform_4(%arg0: i32, %arg1: i32) -> (i32, i32) {
    %c0_i32 = arith.constant 0 : i32
    %c0_i32_0 = arith.constant 0 : i32
    return %arg0, %c0_i32 : i32, i32
  }
  func.func @transform_5(%arg0: i32, %arg1: i32) -> (i32, i32) {
    %c0_i32 = arith.constant 0 : i32
    %c0_i32_0 = arith.constant 0 : i32
    return %arg0, %c0_i32 : i32, i32
  }
}

</mosaic_0001>

<bundles_post_ra>
// kernel: tpu_custom_call.1
= control target key start
LH: loop header
LB: loop body
LE: loop exit
PB: predicated region body
PF: predicated region fallthrough
CT: control target
= control target key end

     0   :  { %11 = vsyncpa [#allocation5], 0  ;;  %s382_s0 = inlined_call_operand.vmem [shape: bf16[8,32], index: 0, kind: input, shape index: {}]   ;;  %s383_s1 = inlined_call_operand.hbm [shape: bf16[32,128], index: 1, kind: input, shape index: {}]   ;;  %s384_s2 = inlined_call_operand.vmem [shape: s32[8,1], index: 2, kind: input, shape index: {}]   ;;  %s385_s3 = inlined_call_operand.hbm [shape: f32[8,128], index: 3, kind: output, shape index: {0}]   ;;  %s386_s4 = inlined_call_operand.vmem [shape: f32[8,1], index: 4, kind: output, shape index: {1}]   ;;  %s387_s5 = inlined_call_operand.vmem [shape: f32[8,1], index: 5, kind: output, shape index: {2}]  }
   0x1   :  { %12 = vsyncpa [#allocation6], 0  ;;  %s290_s18 = smov [#allocation4]   ;;  %s242_s22 = scalar_lea.hbm %s383_s1, 256 }
   0x2   :  { %s20_s19 = sshll.u32 %s290_s18, 4  ;;  %p243_p0 = scmp.ne.s32.totalorder %s383_s1, %s242_s22  ;;  %s21_s19 = int_to_ptr.vmem [resolvable:$true] %s20_s19 }
   0x3   :  { %p246_p1 = scmp.lt.u32.totalorder %s242_s22, %s383_s1 }
   0x5   :  { %p248_p2 = pnand %p246_p1, %p243_p0 }
   0x7   :  { %251 = shalt.err (!%p248_p2)
}
   0x8   :  { %s252_s27 = scalar_lea.vmem %s21_s19, 256  ;;  %p257_p4 = scmp.lt.s32.totalorder %s21_s19, %s21_s19 }
   0x9   :  { %p253_p3 = scmp.ne.s32.totalorder %s21_s19, %s252_s27  ;;  %p258_p5 = scmp.lt.s32.totalorder %s252_s27, %s252_s27 }
   0xb   :  { %p259_p6 = por %p258_p5, %p257_p4 }
   0xd   :  { %p260_p7 = pnand %p259_p6, %p253_p3 }
   0xf   :  { %263 = shalt.err (!%p260_p7)
}
  0x10   :  { %s291_s28 = smov 64   ;;  %s292_s29 = smov 4  }
  0x11   :  { %26 = dma.hbm_to_vmem [thread:$0]  %s383_s1, 256, %s21_s19, [#allocation5], %s291_s28, %s291_s28, %s292_s29  }
  0x12   :  { %286 = dma.done.wait [#allocation5], 256  }
  0x13   :  { %287 = vsyncadd [#allocation5], 4294967040  ;;  %vm37_vm0 = vcmask 7168   ;;  %v293_v0 = vmov 0.0   ;;  %vm294_vm1 = vmmov 0   ;;  %v295_v1 = vmov 0  }
  0x14   :  { %38 = vst.msk [vmem:[#allocation2] sm:$0xff] %vm37_vm0, %v293_v0  ;;  %39 = vst.msk [vmem:[#allocation3] sm:$0xff] %vm37_vm0, %v293_v0  ;;  %214 = vmatprep.subr.bf16.mxu0 %v293_v0  ;;  %218 = vmatprep.mubr.msk.bf16.mxu0 %vm294_vm1, %v293_v0  ;;  %v230_v2 = vld [vmem:[#allocation4] sm:$0xff]   ;;  %v231_v3 = vld [vmem:[#allocation4 + $0x8] sm:$0xff]   ;;  %vm57_vm2 = vcmask 261120   ;;  %v106_v6 = vlaneseq }
  0x15   :  { %229 = vset.pattern.permute.xlu0 %v295_v1  ;;  %215 = vmatpush3.bf16.msra.mxu0 %v230_v2  ;;  %v344_v4 = vld [vmem:[%s384_s2] sm:$0xff] }
  0x16   :  { %216 = vmatprep.subr.bf16.mxu0 %v293_v0  ;;  %111 = vperm.xlu0 %229, %v344_v4   ;;  %v40_v5 = vld [vmem:[%s382_s0] sm:$0xf]  ;;  %v107_v7 = vand.u32 127, %v106_v6  ;;  %s296_s0 = smov [#allocation7]  }
  0x17   :  { %s185_s2 = sshll.u32 %s296_s0, 4  ;;  %s186_s2 = int_to_ptr.vmem [resolvable:$true] %s185_s2 }
  0x18   :  { %vm144_vm4 = vcmp.lt.s32.totalorder %v107_v7, 24  ;;  %s264_s10 = scalar_lea.vmem %s186_s2, 128  ;;  %p269_p9 = scmp.lt.s32.totalorder %s186_s2, %s186_s2 }
  0x19   :  { %217 = vmatpush3.bf16.msra.mxu0 %v231_v3  ;;  %p265_p8 = scmp.ne.s32.totalorder %s186_s2, %s264_s10  ;;  %p270_p10 = scmp.lt.s32.totalorder %s264_s10, %s264_s10 }
  0x1b   :  { %p271_p11 = por %p270_p10, %p269_p9 }
  0x1c   :  { %219 = vmatmul.mubr.msk.bf16.vlgmr.msra.gmra.mrb[0].mxu0 %vm57_vm2, %v40_v5 }
  0x1d   :  { %p272_p12 = pnand %p271_p11, %p265_p8 }
  0x95   :  { %v112_v8 = vpop.permute.xlu0 %111 }
  0x96   :  { %vm113_vm3 = vcmp.eq.s32.totalorder %v107_v7, %v112_v8 }
  0xef   :  { %v95_v9 = vpop.f32.mrb[0].mxu0 }
  0xf0   :  { %v205_v10 = vclamps-f32 %v95_v9, 1.0  ;;  %v220_v11 = vpop.f32.mrb[1].mxu0 }
  0xf1   :  { %v98_v12 = vpop.f32.mrb[2].mxu0 }
  0xf2   :  { %v208_v13 = vadd.f32 -1.0, %v205_v10  ;;  %103 = vst [vmem:[#allocation7] sm:$0xff] %v205_v10  ;;  %v221_v14 = vpop.f32.mrb[3].mxu0  ;;  %v114_v15 = vsel %vm113_vm3, %v205_v10, 0.0 }
  0xf3   :  { %115 = vadd.xlane.f32.xlu0 %v114_v15 }
  0xf4   :  { %v141_v16 = vmul.f32 64.0, %v208_v13 }
  0xf6   :  { %v142_v17 = vmul.f32 1.442695, %v141_v16 }
  0xf8   :  { %232 = vpow2.f32 %v142_v17 }
 0x102   :  { %v233_v18 = vpop.eup %232 }
 0x103   :  { %v145_v19 = vsel %vm144_vm4, %v233_v18, 0.0 }
 0x104   :  { %146 = vadd.xlane.f32.xlu1 %v145_v19 }
 0x105   :  { %275 = shalt.err (!%p272_p12)
}
 0x106   :  { %s276_s13 = scalar_lea.hbm %s385_s3, 128 }
 0x107   :  { %p277_p13 = scmp.ne.s32.totalorder %s385_s3, %s276_s13  ;;  %p280_p0 = scmp.lt.u32.totalorder %s276_s13, %s385_s3 }
 0x109   :  { %p282_p1 = pnand %p280_p0, %p277_p13 }
 0x10b   :  { %285 = shalt.err (!%p282_p1)
}
 0x10c   :  { %188 = dma.vmem_to_hbm [thread:$0]  %s186_s2, 128, %s385_s3, [#allocation6]   ;;  %vm117_vm7 = vcmp.ge.s32.totalorder %v344_v4, 0  ;;  %vm120_vm8 = vcmp.lt.s32.totalorder %v344_v4, 128  ;;  %v162_v39 = vld [vmem:[#allocation3] sm:$0xff]  ;;  %v157_v48 = vld [vmem:[#allocation2] sm:$0xff] }
 0x10d   :  { %vm364_vm10 = vmand %vm117_vm7, %vm120_vm8 }
 0x180   :  { %v116_v20 = vpop.xlane.xlu0 %115 }
 0x181   :  { %v122_v21 = vmul.f32 %v116_v20, %v116_v20  ;;  %v210_v28 = vadd.f32 -1.0, %v116_v20  ;;  %v206_v30 = vadd.f32 0.87758255, %v116_v20  ;;  %v132_v31 = vmul.f32 0.87758255, %v116_v20 }
 0x182   :  { %v207_v34 = vadd.f32 -0.23971277, %v116_v20 }
 0x183   :  { %v123_v22 = vsub.f32 1.0, %v122_v21  ;;  %v152_v35 = vmul.f32 64.0, %v210_v28  ;;  %vm136_vm9 = vcmp.le.f32.partialorder %v206_v30, 0.0 }
 0x185   :  { %v124_v23 = vmax.f32 %v123_v22, 0.0  ;;  %v153_v40 = vmul.f32 1.442695, %v152_v35 }
 0x187   :  { %234 = vrsqrt.f32 %v124_v23  ;;  %vm127_vm5 = vcmp.eq.f32.partialorder %v124_v23, inf  ;;  %v130_v26 = vand.u32 2147483648, %v124_v23  ;;  %vm129_vm6 = vcmp.eq.f32.partialorder %v124_v23, 0.0 }
 0x188   :  { %236 = vpow2.f32 %v153_v40 }
 0x191   :  { %v235_v24 = vpop.eup %234  ;;  %v147_v47 = vpop.xlane.xlu1 %146 }
 0x192   :  { %v126_v25 = vmul.f32 %v235_v24, %v124_v23  ;;  %v237_v46 = vpop.eup %236  ;;  %v158_v51 = vadd.f32 %v157_v48, %v147_v47 }
 0x194   :  { %v128_v27 = vsel %vm127_vm5, %v124_v23, %v126_v25 }
 0x195   :  { %v131_v29 = vsel %vm129_vm6, %v130_v26, %v128_v27 }
 0x196   :  { %v133_v32 = vmul.f32 0.47942555, %v131_v29 }
 0x198   :  { %v134_v33 = vsub.f32 %v132_v31, %v133_v32 }
 0x19a   :  { %v138_v37 = vsel %vm136_vm9, %v207_v34, %v134_v33 }
 0x19b   :  { %v139_v38 = vmul.f32 64.0, %v138_v37 }
 0x19d   :  { %v209_v41 = vadd.f32 -64.0, %v139_v38  ;;  %v163_v42 = vsel %vm364_vm10, %v139_v38, 0.0 }
 0x19e   :  { %v164_v43 = vadd.f32 %v163_v42, %v162_v39 }
 0x19f   :  { %v149_v44 = vmul.f32 1.442695, %v209_v41 }
 0x1a0   :  { %165 = vst.msk [vmem:[#allocation3] sm:$0xff] %vm37_vm0, %v164_v43 }
 0x1a1   :  { %238 = vpow2.f32 %v149_v44 }
 0x1a7   :  { %v174_v45 = vld [vmem:[#allocation3] sm:$0xff] }
 0x1a8   :  { %178 = vst.msk [vmem:[%s387_s5] sm:$0xff] %vm37_vm0, %v174_v45 }
 0x1ab   :  { %v239_v49 = vpop.eup %238 }
 0x1ac   :  { %v155_v50 = vsub.f32 %v239_v49, %v237_v46 }
 0x1ae   :  { %v156_v52 = vsel %vm364_vm10, %v155_v50, 0.0 }
 0x1af   :  { %v159_v53 = vadd.f32 %v158_v51, %v156_v52 }
 0x1b1   :  { %161 = vst.msk [vmem:[#allocation2] sm:$0xff] %vm37_vm0, %v159_v53 }
 0x1b8   :  { %v169_v54 = vld [vmem:[#allocation2] sm:$0xff] }
 0x1b9   :  { %v170_v55 = vmax.f32 %v169_v54, 1e-30 }
 0x1bb   :  { %240 = vlog2.f32 %v170_v55 }
 0x1c5   :  { %v241_v56 = vpop.eup %240 }
 0x1c6   :  { %v172_v57 = vmul.f32 0.6931472, %v241_v56 }
 0x1c8   :  { %v173_v58 = vadd.f32 64.0, %v172_v57 }
 0x1ca   :  { %v175_v59 = vsub.f32 %v173_v58, %v174_v45 }
 0x1cc   :  { %176 = vst.msk [vmem:[%s386_s4] sm:$0xff] %vm37_vm0, %v175_v59 }
 0x1cd   :  { %288 = dma.done.wait [#allocation6], 128  }
 0x1ce   :  { %289 = vsyncadd [#allocation6], 4294967168 }
 0x1cf   :  { %200 = vsyncpa [#allocation5], 1 }
 0x1d0   :  { %201 = vsyncpa [#allocation6], 1 }

</bundles_post_ra>
